<compile_context>
chip_gen: v5e
topology: v5e:2x2
jax: 0.10.0
libtpu: 0.0.40
codegen_flags: <defaults>
</compile_context>

<pallas_src>
import jax
import jax.numpy as jnp
from jax import lax
from jax.experimental import pallas as pl
from jax.experimental.pallas import tpu as pltpu


# ~2 MiB per streamed block: with double-buffered input + output plus f32
# temporaries this keeps live VMEM comfortably inside v7x (64 MiB physical)
# and v5e/v6e scoped limits.
_TARGET_BLOCK_BYTES = 2 * 1024 * 1024
_VMEM_LIMIT_BYTES = 32 * 1024 * 1024
_MAX_BATCH_PER_BLOCK = 8  # cap static unrolling in the fused kernel


def _choose_spatial_tile(hw, col_bytes, target_bytes):
    """Lane tile for the H*W axis: whole extent if it fits, else a multiple of
    128 that is >= 512 lanes and ~target_bytes per block."""
    if hw * col_bytes <= target_bytes:
        return hw
    t = (target_bytes // col_bytes) // 128 * 128
    t = max(t, 512)
    return min(t, hw)


# ----------------------------------------------------------------------------
# Fused single-pass kernel (per-image slab fits in a block).
# ----------------------------------------------------------------------------
def _make_fused_kernel(nb, hw):
    inv_hw = 1.0 / float(hw)

    def kernel(x_ref, w1_ref, b1_ref, w2_ref, b2_ref, o_ref):
        # x_ref/o_ref: (Nb, C, HW)   w1: (C_red, C)  b1: (C_red, 1)
        # w2: (C, C_red)             b2: (C, 1)
        w1 = w1_ref[...]
        b1 = b1_ref[...]
        w2 = w2_ref[...]
        b2 = b2_ref[...]
        for i in range(nb):  # static unroll, nb <= _MAX_BATCH_PER_BLOCK
            xi = x_ref[i].astype(jnp.float32)                      # (C, HW)
            pooled = jnp.sum(xi, axis=-1, keepdims=True) * inv_hw  # (C, 1)
            # 1x1 conv #1 (C -> C_red) + bias + ReLU as a column matvec.
            z1 = jnp.dot(w1, pooled,
                         preferred_element_type=jnp.float32) + b1
            z1 = jnp.maximum(z1, 0.0)                              # (C_red, 1)
            # 1x1 conv #2 (C_red -> C) + bias + Sigmoid.
            z2 = jnp.dot(w2, z1,
                         preferred_element_type=jnp.float32) + b2
            s = jax.nn.sigmoid(z2)                                 # (C, 1)
            o_ref[i] = (xi * s).astype(o_ref.dtype)

    return kernel


# ----------------------------------------------------------------------------
# Two-pass fallback for large per-image slabs.
# ----------------------------------------------------------------------------
def _make_pool_scale_kernel(hw, tile, need_mask):
    """Pass 1: accumulate channel sums over spatial tiles, then compute the
    per-channel sigmoid scale with column-vector dots."""

    def kernel(x_ref, w1_ref, b1_ref, w2_ref, b2_ref, s_ref, acc_ref):
        # x_ref: (1, C, tile)  w1: (C_red, C)  b1: (C_red, 1)
        # w2: (C, C_red)       b2: (C, 1)      s_ref: (1, C, 1)
        # acc_ref scratch: (C, 1) f32, persists across the spatial grid axis.
        t = pl.program_id(1)

        @pl.when(t == 0)
        def _init():
            acc_ref[...] = jnp.zeros_like(acc_ref)

        x = x_ref[0].astype(jnp.float32)                      # (C, tile)
        if need_mask:
            # Last tile may run past H*W; zero out-of-range columns so the
            # sum (and therefore the mean) stays exact.
            col = t * tile + lax.broadcasted_iota(jnp.int32, x.shape, 1)
            x = jnp.where(col < hw, x, 0.0)
        acc_ref[...] += jnp.sum(x, axis=-1, keepdims=True)    # (C, 1)

        @pl.when(t == pl.num_programs(1) - 1)
        def _finish():
            pooled = acc_ref[...] * (1.0 / float(hw))         # (C, 1) mean
            z1 = jnp.dot(w1_ref[...], pooled,
                         preferred_element_type=jnp.float32) + b1_ref[...]
            z1 = jnp.maximum(z1, 0.0)                         # (C_red, 1)
            z2 = jnp.dot(w2_ref[...], z1,
                         preferred_element_type=jnp.float32) + b2_ref[...]
            s_ref[0] = jax.nn.sigmoid(z2).astype(s_ref.dtype)  # (C, 1)

    return kernel


def _rescale_kernel(x_ref, s_ref, o_ref):
    # x_ref: (Nb, C, tile)  s_ref: (Nb, C, 1)  o_ref: (Nb, C, tile)
    x = x_ref[...].astype(jnp.float32)
    o_ref[...] = (x * s_ref[...]).astype(o_ref.dtype)


# ----------------------------------------------------------------------------
# Public entry point.
# ----------------------------------------------------------------------------
def ca_layer(x, w1, b1, w2, b2, *, target_block_bytes=_TARGET_BLOCK_BYTES):
    """Channel-attention layer.

    x:  (N, C, H, W)
    w1: (C_red, C)   b1: (C_red,)
    w2: (C, C_red)   b2: (C,)
    returns (N, C, H, W), same dtype as x
    """
    N, C, H, W = x.shape
    HW = H * W
    C_red = w1.shape[0]
    itemsize = jnp.dtype(x.dtype).itemsize

    x3 = x.reshape(N, C, HW)
    w1f = w1.astype(jnp.float32)
    w2f = w2.astype(jnp.float32)
    b1c = b1.reshape(C_red, 1).astype(jnp.float32)
    b2c = b2.reshape(C, 1).astype(jnp.float32)

    per_batch_bytes = C * HW * itemsize

    # ------------------------------------------------------------------
    # Fast path: fused single pass (x read from HBM exactly once).
    # ------------------------------------------------------------------
    if per_batch_bytes <= target_block_bytes:
        Nb = max(1, min(N, target_block_bytes // per_batch_bytes,
                        _MAX_BATCH_PER_BLOCK))
        while N % Nb:
            Nb -= 1

        out3 = pl.pallas_call(
            _make_fused_kernel(Nb, HW),
            out_shape=jax.ShapeDtypeStruct((N, C, HW), x.dtype),
            grid_spec=pltpu.PrefetchScalarGridSpec(
                num_scalar_prefetch=0,
                grid=(N // Nb,),
                in_specs=[
                    pl.BlockSpec((Nb, C, HW), lambda n: (n, 0, 0)),
                    # Constant block indices -> parameters DMA'd once.
                    pl.BlockSpec((C_red, C), lambda n: (0, 0)),
                    pl.BlockSpec((C_red, 1), lambda n: (0, 0)),
                    pl.BlockSpec((C, C_red), lambda n: (0, 0)),
                    pl.BlockSpec((C, 1), lambda n: (0, 0)),
                ],
                out_specs=pl.BlockSpec((Nb, C, HW), lambda n: (n, 0, 0)),
            ),
            compiler_params=pltpu.CompilerParams(
                dimension_semantics=("parallel",),
                vmem_limit_bytes=_VMEM_LIMIT_BYTES),
        )(x3, w1f, b1c, w2f, b2c)
        return out3.reshape(N, C, H, W)

    # ------------------------------------------------------------------
    # Fallback: two spatially tiled passes for large per-image slabs.
    # ------------------------------------------------------------------
    # Pass 1: global average pool + squeeze-excite -> scales (N, C, 1) f32.
    T1 = _choose_spatial_tile(HW, C * itemsize, target_block_bytes)
    nt1 = pl.cdiv(HW, T1)
    need_mask = (HW % T1) != 0

    scales = pl.pallas_call(
        _make_pool_scale_kernel(HW, T1, need_mask),
        out_shape=jax.ShapeDtypeStruct((N, C, 1), jnp.float32),
        grid_spec=pltpu.PrefetchScalarGridSpec(
            num_scalar_prefetch=0,
            grid=(N, nt1),
            in_specs=[
                pl.BlockSpec((1, C, T1), lambda n, t: (n, 0, t)),
                pl.BlockSpec((C_red, C), lambda n, t: (0, 0)),
                pl.BlockSpec((C_red, 1), lambda n, t: (0, 0)),
                pl.BlockSpec((C, C_red), lambda n, t: (0, 0)),
                pl.BlockSpec((C, 1), lambda n, t: (0, 0)),
            ],
            out_specs=pl.BlockSpec((1, C, 1), lambda n, t: (n, 0, 0)),
            scratch_shapes=[pltpu.VMEM((C, 1), jnp.float32)],
        ),
        compiler_params=pltpu.CompilerParams(
            dimension_semantics=("parallel", "arbitrary"),
            vmem_limit_bytes=_VMEM_LIMIT_BYTES),
    )(x3, w1f, b1c, w2f, b2c)

    # Pass 2: o = x * s, streamed over (batch, spatial) tiles, fully parallel.
    T2 = T1
    nt2 = pl.cdiv(HW, T2)
    if nt2 == 1:
        Nb = max(1, min(N, target_block_bytes // per_batch_bytes))
        while N % Nb:
            Nb -= 1
    else:
        Nb = 1

    out3 = pl.pallas_call(
        _rescale_kernel,
        out_shape=jax.ShapeDtypeStruct((N, C, HW), x.dtype),
        grid_spec=pltpu.PrefetchScalarGridSpec(
            num_scalar_prefetch=0,
            grid=(N // Nb, nt2),
            in_specs=[
                pl.BlockSpec((Nb, C, T2), lambda n, t: (n, 0, t)),
                pl.BlockSpec((Nb, C, 1), lambda n, t: (n, 0, 0)),
            ],
            out_specs=pl.BlockSpec((Nb, C, T2), lambda n, t: (n, 0, t)),
        ),
        compiler_params=pltpu.CompilerParams(
            dimension_semantics=("parallel", "parallel"),
            vmem_limit_bytes=_VMEM_LIMIT_BYTES),
    )(x3, scales)

    return out3.reshape(N, C, H, W)


def ca_layer_ref(x, w1, b1, w2, b2):
    # pure-JAX reference of the PyTorch forward
    y = jnp.mean(x, axis=(2, 3), keepdims=True)                       # (N,C,1,1)
    y = jnp.einsum('rc,nchw->nrhw', w1, y) + b1[None, :, None, None]  # (N,C_red,1,1)
    y = jnp.maximum(y, 0.0)
    y = jnp.einsum('cr,nrhw->nchw', w2, y) + b2[None, :, None, None]  # (N,C,1,1)
    y = jax.nn.sigmoid(y)
    return x * y


if __name__ == "__main__":
    # Small shapes consistent with the module: channel=32, reduction=16.
    N, C, H, W = 2, 32, 16, 16
    reduction = 16
    C_red = C // reduction

    key = jax.random.PRNGKey(0)
    kx, k1, k2, k3, k4, kx2 = jax.random.split(key, 6)

    x = jax.random.normal(kx, (N, C, H, W), dtype=jnp.float32)
    # deterministic synthetic params (Conv2d 1x1 weights squeezed to 2-D)
    w1 = jax.random.normal(k1, (C_red, C), dtype=jnp.float32) * 0.1
    b1 = jax.random.normal(k2, (C_red,), dtype=jnp.float32) * 0.1
    w2 = jax.random.normal(k3, (C, C_red), dtype=jnp.float32) * 0.1
    b2 = jax.random.normal(k4, (C,), dtype=jnp.float32) * 0.1

    # Fused single-pass path.
    out = jax.block_until_ready(ca_layer(x, w1, b1, w2, b2))
    ref = jax.block_until_ready(ca_layer_ref(x, w1, b1, w2, b2))
    assert out.shape == x.shape and out.dtype == x.dtype
    assert jnp.allclose(out, ref, atol=1e-5, rtol=1e-5), "fused path mismatch"

    # Also exercise the tiled two-pass fallback (large-image path) by forcing
    # a tiny block budget on a modest, non-128-multiple spatial extent.
    x2 = jax.random.normal(kx2, (1, C, 40, 40), dtype=jnp.float32)
    out2 = jax.block_until_ready(
        ca_layer(x2, w1, b1, w2, b2, target_block_bytes=64 * 1024))
    ref2 = jax.block_until_ready(ca_layer_ref(x2, w1, b1, w2, b2))
    assert jnp.allclose(out2, ref2, atol=1e-5, rtol=1e-5), "tiled path mismatch"

    print("KERNEL_OK")
</pallas_src>

<mosaic_0001>
module attributes {stable_mosaic.version = 11 : i64} {
  func.func @kernel(%arg0: i32, %arg1: memref<2x32x256xf32, #tpu.memory_space<vmem>>, %arg2: memref<2x32xf32, #tpu.memory_space<vmem>>, %arg3: memref<2x1xf32, #tpu.memory_space<vmem>>, %arg4: memref<32x2xf32, #tpu.memory_space<vmem>>, %arg5: memref<32x1xf32, #tpu.memory_space<vmem>>, %arg6: memref<2x32x256xf32, #tpu.memory_space<vmem>>) attributes {dimension_semantics = [#tpu.dimension_semantics<parallel>], iteration_bounds = array<i64: 1>, scalar_prefetch = 0 : i64, scratch_operands = 0 : i64, tpu.core_type = #tpu.core_type<tc>, window_params = [{transform_indices = @transform_0, window_bounds = array<i64: 2, 32, 256>}, {pipeline_mode = #tpu.pipeline_mode<synchronous>, transform_indices = @transform_1, window_bounds = array<i64: 2, 32>}, {pipeline_mode = #tpu.pipeline_mode<synchronous>, transform_indices = @transform_2, window_bounds = array<i64: 2, 1>}, {pipeline_mode = #tpu.pipeline_mode<synchronous>, transform_indices = @transform_3, window_bounds = array<i64: 32, 2>}, {pipeline_mode = #tpu.pipeline_mode<synchronous>, transform_indices = @transform_4, window_bounds = array<i64: 32, 1>}, {transform_indices = @transform_5, window_bounds = array<i64: 2, 32, 256>}]} {
    %c0 = arith.constant 0 : index
    %c0_0 = arith.constant 0 : index
    %0 = vector.load %arg2[%c0, %c0_0] : memref<2x32xf32, #tpu.memory_space<vmem>>, vector<2x32xf32>
    %c0_1 = arith.constant 0 : index
    %c0_2 = arith.constant 0 : index
    %1 = vector.load %arg3[%c0_1, %c0_2] : memref<2x1xf32, #tpu.memory_space<vmem>>, vector<2x1xf32>
    %c0_3 = arith.constant 0 : index
    %c0_4 = arith.constant 0 : index
    %2 = vector.load %arg4[%c0_3, %c0_4] : memref<32x2xf32, #tpu.memory_space<vmem>>, vector<32x2xf32>
    %c0_5 = arith.constant 0 : index
    %c0_6 = arith.constant 0 : index
    %3 = vector.load %arg5[%c0_5, %c0_6] : memref<32x1xf32, #tpu.memory_space<vmem>>, vector<32x1xf32>
    %c0_7 = arith.constant 0 : index
    %c0_8 = arith.constant 0 : index
    %c0_9 = arith.constant 0 : index
    %4 = vector.load %arg1[%c0_7, %c0_8, %c0_9] : memref<2x32x256xf32, #tpu.memory_space<vmem>>, vector<1x32x256xf32>
    %5 = vector.shape_cast %4 : vector<1x32x256xf32> to vector<32x256xf32>
    %cst = arith.constant dense<0.000000e+00> : vector<32xf32>
    %6 = vector.multi_reduction <add>, %5, %cst [1] : vector<32x256xf32> to vector<32xf32>
    %7 = vector.shape_cast %6 : vector<32xf32> to vector<32x1xf32>
    %cst_10 = arith.constant 3.906250e-03 : f32
    %8 = vector.broadcast %cst_10 : f32 to vector<32x1xf32>
    %9 = arith.mulf %7, %8 : vector<32x1xf32>
    %cst_11 = arith.constant dense<0.000000e+00> : vector<2x1xf32>
    %10 = tpu.matmul %0, %9, %cst_11 {dimension_numbers = #tpu.dot_dimension_numbers<[1], [0], [0], [1], [0, 0, 1, 1], [], []>} : vector<2x32xf32>, vector<32x1xf32>, vector<2x1xf32> -> vector<2x1xf32>
    %11 = arith.addf %10, %1 : vector<2x1xf32>
    %cst_12 = arith.constant 0.000000e+00 : f32
    %12 = vector.broadcast %cst_12 : f32 to vector<2x1xf32>
    %13 = arith.maximumf %11, %12 : vector<2x1xf32>
    %cst_13 = arith.constant dense<0.000000e+00> : vector<32x1xf32>
    %14 = tpu.matmul %2, %13, %cst_13 {dimension_numbers = #tpu.dot_dimension_numbers<[1], [0], [0], [1], [0, 0, 1, 1], [], []>} : vector<32x2xf32>, vector<2x1xf32>, vector<32x1xf32> -> vector<32x1xf32>
    %15 = arith.addf %14, %3 : vector<32x1xf32>
    %16 = arith.negf %15 : vector<32x1xf32>
    %17 = math.exp %16 : vector<32x1xf32>
    %cst_14 = arith.constant 1.000000e+00 : f32
    %18 = vector.broadcast %cst_14 : f32 to vector<32x1xf32>
    %19 = arith.addf %18, %17 : vector<32x1xf32>
    %20 = arith.divf %18, %19 : vector<32x1xf32>
    %21 = vector.broadcast %20 : vector<32x1xf32> to vector<32x256xf32>
    %22 = arith.mulf %5, %21 : vector<32x256xf32>
    %c0_15 = arith.constant 0 : index
    %c0_16 = arith.constant 0 : index
    %c0_17 = arith.constant 0 : index
    %23 = vector.load %arg6[%c0_15, %c0_16, %c0_17] : memref<2x32x256xf32, #tpu.memory_space<vmem>>, vector<1x32x256xf32>
    %24 = vector.shape_cast %23 : vector<1x32x256xf32> to vector<32x256xf32>
    %25 = vector.shape_cast %22 : vector<32x256xf32> to vector<1x32x256xf32>
    tpu.vector_store %arg6[%c0_15, %c0_16, %c0_17], %25 {strides = array<i32>} : memref<2x32x256xf32, #tpu.memory_space<vmem>>, vector<1x32x256xf32>,
    %c1 = arith.constant 1 : index
    %c0_18 = arith.constant 0 : index
    %c0_19 = arith.constant 0 : index
    %26 = vector.load %arg1[%c1, %c0_18, %c0_19] : memref<2x32x256xf32, #tpu.memory_space<vmem>>, vector<1x32x256xf32>
    %27 = vector.shape_cast %26 : vector<1x32x256xf32> to vector<32x256xf32>
    %cst_20 = arith.constant dense<0.000000e+00> : vector<32xf32>
    %28 = vector.multi_reduction <add>, %27, %cst_20 [1] : vector<32x256xf32> to vector<32xf32>
    %29 = vector.shape_cast %28 : vector<32xf32> to vector<32x1xf32>
    %cst_21 = arith.constant 3.906250e-03 : f32
    %30 = vector.broadcast %cst_21 : f32 to vector<32x1xf32>
    %31 = arith.mulf %29, %30 : vector<32x1xf32>
    %cst_22 = arith.constant dense<0.000000e+00> : vector<2x1xf32>
    %32 = tpu.matmul %0, %31, %cst_22 {dimension_numbers = #tpu.dot_dimension_numbers<[1], [0], [0], [1], [0, 0, 1, 1], [], []>} : vector<2x32xf32>, vector<32x1xf32>, vector<2x1xf32> -> vector<2x1xf32>
    %33 = arith.addf %32, %1 : vector<2x1xf32>
    %cst_23 = arith.constant 0.000000e+00 : f32
    %34 = vector.broadcast %cst_23 : f32 to vector<2x1xf32>
    %35 = arith.maximumf %33, %34 : vector<2x1xf32>
    %cst_24 = arith.constant dense<0.000000e+00> : vector<32x1xf32>
    %36 = tpu.matmul %2, %35, %cst_24 {dimension_numbers = #tpu.dot_dimension_numbers<[1], [0], [0], [1], [0, 0, 1, 1], [], []>} : vector<32x2xf32>, vector<2x1xf32>, vector<32x1xf32> -> vector<32x1xf32>
    %37 = arith.addf %36, %3 : vector<32x1xf32>
    %38 = arith.negf %37 : vector<32x1xf32>
    %39 = math.exp %38 : vector<32x1xf32>
    %cst_25 = arith.constant 1.000000e+00 : f32
    %40 = vector.broadcast %cst_25 : f32 to vector<32x1xf32>
    %41 = arith.addf %40, %39 : vector<32x1xf32>
    %42 = arith.divf %40, %41 : vector<32x1xf32>
    %43 = vector.broadcast %42 : vector<32x1xf32> to vector<32x256xf32>
    %44 = arith.mulf %27, %43 : vector<32x256xf32>
    %c1_26 = arith.constant 1 : index
    %c0_27 = arith.constant 0 : index
    %c0_28 = arith.constant 0 : index
    %45 = vector.load %arg6[%c1_26, %c0_27, %c0_28] : memref<2x32x256xf32, #tpu.memory_space<vmem>>, vector<1x32x256xf32>
    %46 = vector.shape_cast %45 : vector<1x32x256xf32> to vector<32x256xf32>
    %47 = vector.shape_cast %44 : vector<32x256xf32> to vector<1x32x256xf32>
    tpu.vector_store %arg6[%c1_26, %c0_27, %c0_28], %47 {strides = array<i32>} : memref<2x32x256xf32, #tpu.memory_space<vmem>>, vector<1x32x256xf32>,
    return
  }
  func.func @transform_0(%arg0: i32) -> (i32, i32, i32) {
    %c0_i32 = arith.constant 0 : i32
    %c0_i32_0 = arith.constant 0 : i32
    %c0_i32_1 = arith.constant 0 : i32
    return %arg0, %c0_i32, %c0_i32_0 : i32, i32, i32
  }
  func.func @transform_1(%arg0: i32) -> (i32, i32) {
    %c0_i32 = arith.constant 0 : i32
    %c0_i32_0 = arith.constant 0 : i32
    %c0_i32_1 = arith.constant 0 : i32
    return %c0_i32, %c0_i32_0 : i32, i32
  }
  func.func @transform_2(%arg0: i32) -> (i32, i32) {
    %c0_i32 = arith.constant 0 : i32
    %c0_i32_0 = arith.constant 0 : i32
    %c0_i32_1 = arith.constant 0 : i32
    return %c0_i32, %c0_i32_0 : i32, i32
  }
  func.func @transform_3(%arg0: i32) -> (i32, i32) {
    %c0_i32 = arith.constant 0 : i32
    %c0_i32_0 = arith.constant 0 : i32
    %c0_i32_1 = arith.constant 0 : i32
    return %c0_i32, %c0_i32_0 : i32, i32
  }
  func.func @transform_4(%arg0: i32) -> (i32, i32) {
    %c0_i32 = arith.constant 0 : i32
    %c0_i32_0 = arith.constant 0 : i32
    %c0_i32_1 = arith.constant 0 : i32
    return %c0_i32, %c0_i32_0 : i32, i32
  }
  func.func @transform_5(%arg0: i32) -> (i32, i32, i32) {
    %c0_i32 = arith.constant 0 : i32
    %c0_i32_0 = arith.constant 0 : i32
    %c0_i32_1 = arith.constant 0 : i32
    return %arg0, %c0_i32, %c0_i32_0 : i32, i32, i32
  }
}

</mosaic_0001>

<bundles_post_ra>
// kernel: tpu_custom_call.1
= control target key start
LH: loop header
LB: loop body
LE: loop exit
PB: predicated region body
PF: predicated region fallthrough
CT: control target
= control target key end

     0   :  { %10 = vsyncpa [#allocation3], 0  ;;  %s799_s0 = inlined_call_operand.hbm [shape: f32[2,32,256], index: 0, kind: input, shape index: {}]   ;;  %s800_s1 = inlined_call_operand.vmem [shape: f32[2,32], index: 1, kind: input, shape index: {}]   ;;  %s801_s2 = inlined_call_operand.vmem [shape: f32[2,1], index: 2, kind: input, shape index: {}]   ;;  %s802_s3 = inlined_call_operand.vmem [shape: f32[32,2], index: 3, kind: input, shape index: {}]   ;;  %s803_s4 = inlined_call_operand.vmem [shape: f32[32,1], index: 4, kind: input, shape index: {}]   ;;  %s804_s5 = inlined_call_operand.hbm [shape: f32[2,32,256], index: 5, kind: output, shape index: {}]  }
   0x1   :  { %11 = vsyncpa [#allocation4], 0  ;;  %s16_s20 = sshll.u32 %s799_s0, 4  ;;  %s578_s21 = smov [#allocation2]   ;;  %s17_s20 = int_to_ptr.hbm [resolvable:$true] %s16_s20 }
   0x2   :  { %s18_s22 = sshll.u32 %s578_s21, 4  ;;  %s579_s23 = smov 256   ;;  %s19_s22 = int_to_ptr.vmem [resolvable:$true] %s18_s22 }
   0x3   :  { %s580_s24 = smov 16  }
   0x4   :  { %24 = dma.hbm_to_vmem [thread:$0]  %s17_s20, 2048, %s19_s22, [#allocation3], %s579_s23, %s579_s23, %s580_s24  }
   0x5   :  { %574 = dma.done.wait [#allocation3], 2048  }
   0x6   :  { %575 = vsyncadd [#allocation3], 4294965248  ;;  %v619_v0 = vld [vmem:[#allocation2 + $0x70] sm:$0xff]  ;;  %v621_v1 = vld [vmem:[#allocation2 + $0x78] sm:$0xff]  ;;  %vm71_vm0 = vcmask 261120   ;;  %vm109_vm1 = vcmask 1041408  }
   0x7   :  { %v623_v2 = vld [vmem:[#allocation2 + $0x50] sm:$0xff]  ;;  %v272_v3 = vadd.f32 %v621_v1, %v619_v0  ;;  %v627_v4 = vld [vmem:[#allocation2 + $0x58] sm:$0xff]  ;;  %v637_v9 = vld [vmem:[#allocation2 + $0x60] sm:$0xff]  ;;  %vm96_vm2 = vcmask 15360   ;;  %v581_v58 = vmov 0   ;;  %s451_s19 = sshll.u32 %s804_s5, 4  ;;  %s452_s19 = int_to_ptr.hbm [resolvable:$true] %s451_s19 }
   0x8   :  { %v629_v5 = vld [vmem:[#allocation2 + $0x30] sm:$0xff]  ;;  %v631_v6 = vld [vmem:[#allocation2 + $0x38] sm:$0xff]  ;;  %v266_v7 = vadd.f32 %v627_v4, %v623_v2  ;;  %v639_v10 = vld [vmem:[#allocation2 + $0x68] sm:$0xff]  ;;  %492 = vset.pattern.permute.xlu0 %v581_v58  ;;  %491 = vset.pattern.permute.xlu2 %v581_v58 }
   0x9   :  { %v64_v8 = vadd.f32 %v631_v6, %v629_v5  ;;  %273 = vadd.xlane.f32.xlu0 %v272_v3  ;;  %v641_v11 = vld [vmem:[#allocation2 + $0x40] sm:$0xff]  ;;  %v643_v12 = vld [vmem:[#allocation2 + $0x48] sm:$0xff]  ;;  %v269_v15 = vadd.f32 %v639_v10, %v637_v9  ;;  %v655_v18 = vld [vmem:[#allocation2 + $0x10] sm:$0xff]  ;;  %493 = vset.pattern.permute.xlu1 %v581_v58 }
   0xa   :  { %267 = vadd.xlane.f32.xlu1 %v266_v7  ;;  %v645_v13 = vld [vmem:[#allocation2 + $0x20] sm:$0xff]  ;;  %v647_v14 = vld [vmem:[#allocation2 + $0x28] sm:$0xff]  ;;  %v263_v16 = vadd.f32 %v643_v12, %v641_v11  ;;  %v657_v19 = vld [vmem:[#allocation2 + $0x18] sm:$0xff] }
   0xb   :  { %65 = vadd.xlane.f32.xlu2 %v64_v8  ;;  %v61_v17 = vadd.f32 %v647_v14, %v645_v13  ;;  %v659_v20 = vld [vmem:[#allocation2] sm:$0xff]  ;;  %v661_v21 = vld [vmem:[#allocation2 + $0x8] sm:$0xff]  ;;  %v58_v22 = vadd.f32 %v657_v19, %v655_v18  ;;  %v41_v50 = vld [vmem:[%s802_s3 + $0x10] sm:$0xff] }
   0xc   :  { %v55_v23 = vadd.f32 %v661_v21, %v659_v20  ;;  %v37_v36 = vld [vmem:[%s800_s1] sm:$0x3]  ;;  %v40_v49 = vld [vmem:[%s802_s3 + $0x8] sm:$0xff]  ;;  %v42_v51 = vld [vmem:[%s802_s3 + $0x18] sm:$0xff] }
   0xd   :  { %v38_v41 = vld [vmem:[%s801_s2] sm:$0x3]  ;;  %v44_v53 = vld [vmem:[%s803_s4 + $0x8] sm:$0xff]  ;;  %v45_v62 = vld [vmem:[%s803_s4 + $0x10] sm:$0xff] }
   0xe   :  { %v39_v48 = vld [vmem:[%s802_s3] sm:$0xff] }
   0xf   :  { %v43_v52 = vld [vmem:[%s803_s4] sm:$0xff] }
  0x11   :  { %270 = vadd.xlane.f32.xlu0 %v269_v15 }
  0x12   :  { %264 = vadd.xlane.f32.xlu1 %v263_v16 }
  0x13   :  { %62 = vadd.xlane.f32.xlu2 %v61_v17 }
  0x19   :  { %59 = vadd.xlane.f32.xlu0 %v58_v22 }
  0x1a   :  { %56 = vadd.xlane.f32.xlu1 %v55_v23 }
  0x7c   :  { %v274_v24 = vpop.xlane.xlu0 %273 }
  0x7d   :  { %v268_v25 = vpop.xlane.xlu1 %267  ;;  %v278_v26 = vmul.f32 0.00390625, %v274_v24 }
  0x7e   :  { %v66_v27 = vpop.xlane.xlu2 %65  ;;  %v276_v34 = vmul.f32 0.00390625, %v268_v25 }
  0x7f   :  { %v70_v28 = vmul.f32 0.00390625, %v66_v27  ;;  %291 = vmatpush.msra.mxu2 %v278_v26 }
  0x81   :  { %87 = vmatpush.msra.mxu0 %v70_v28  ;;  %v46_v28 = vld [vmem:[%s803_s4 + $0x18] sm:$0xff]  ;;  %s582_s4 = smov [#allocation5]  }
  0x82   :  { %s449_s16 = sshll.u32 %s582_s4, 4  ;;  %s450_s16 = int_to_ptr.vmem [resolvable:$true] %s449_s16 }
  0x84   :  { %v271_v29 = vpop.xlane.xlu0 %270 }
  0x85   :  { %v277_v30 = vmul.f32 0.00390625, %v271_v29  ;;  %v265_v31 = vpop.xlane.xlu1 %264 }
  0x86   :  { %v63_v32 = vpop.xlane.xlu2 %62  ;;  %v275_v35 = vmul.f32 0.00390625, %v265_v31 }
  0x87   :  { %v69_v33 = vmul.f32 0.00390625, %v63_v32  ;;  %292 = vmatpush.msra.mxu2 %v277_v30 }
  0x89   :  { %88 = vmatpush.msra.mxu0 %v69_v33  ;;  %293 = vmatpush.msra.mxu2 %v276_v34 }
  0x8b   :  { %294 = vmatpush.msra.mxu2 %v275_v35 }
  0x8c   :  { %v60_v37 = vpop.xlane.xlu0 %59  ;;  %474 = vmatmul.msk.f32.vlgmr.msra.gmra.mxu2 %vm71_vm0, %v37_v36 }
  0x8d   :  { %v68_v38 = vmul.f32 0.00390625, %v60_v37  ;;  %v57_v39 = vpop.xlane.xlu1 %56 }
  0x8e   :  { %v67_v40 = vmul.f32 0.00390625, %v57_v39 }
  0x8f   :  { %89 = vmatpush.msra.mxu0 %v68_v38 }
  0x91   :  { %90 = vmatpush.msra.mxu0 %v67_v40 }
  0x92   :  { %464 = vmatmul.msk.f32.vlgmr.msra.gmra.mxu0 %vm71_vm0, %v37_v36 }
 0x10f   :  { %v92_v42 = vpop.f32.mrf.mxu0  ;;  %v296_v43 = vpop.f32.mrf.mxu2 }
 0x110   :  { %v93_v44 = vadd.f32 %v92_v42, %v38_v41  ;;  %v297_v45 = vadd.f32 %v296_v43, %v38_v41 }
 0x112   :  { %v95_v46 = vmax.f32 %v93_v44, 0.0  ;;  %v299_v47 = vmax.f32 %v297_v45, 0.0 }
 0x114   :  { %465 = vmatpush.msk.msrb.mxu0 %vm109_vm1, %v95_v46  ;;  %484 = vmatpush.msk.msra.mxu1 %vm109_vm1, %v95_v46 }
 0x115   :  { %485 = vmatpush.msk.msra.mxu3 %vm109_vm1, %v299_v47  ;;  %466 = vmatmul.msk.f32.vlgmr.msrb.gmra.mxu0 %vm96_vm2, %v39_v48 }
 0x116   :  { %467 = vmatmul.msk.f32.vlgmr.msra.gmra.mxu1 %vm96_vm2, %v40_v49  ;;  %477 = vmatmul.msk.f32.vlgmr.msra.gmra.mxu3 %vm96_vm2, %v40_v49 }
 0x117   :  { %475 = vmatpush.msk.msrb.mxu2 %vm109_vm1, %v299_v47 }
 0x118   :  { %476 = vmatmul.msk.f32.vlgmr.msrb.gmra.mxu2 %vm96_vm2, %v39_v48 }
 0x11e   :  { %468 = vmatmul.msk.f32.gmra.mxu1 %vm96_vm2, %v41_v50  ;;  %478 = vmatmul.msk.f32.gmra.mxu3 %vm96_vm2, %v41_v50 }
 0x126   :  { %469 = vmatmul.msk.f32.gmra.mxu1 %vm96_vm2, %v42_v51  ;;  %479 = vmatmul.msk.f32.gmra.mxu3 %vm96_vm2, %v42_v51 }
 0x192   :  { %v130_v54 = vpop.f32.mrf.mxu0 }
 0x193   :  { %v131_v55 = vadd.f32 %v130_v54, %v43_v52  ;;  %v133_v56 = vpop.f32.mrf.mxu1 }
 0x194   :  { %v134_v57 = vadd.f32 %v133_v56, %v44_v53 }
 0x195   :  { %v470_v59 = vmul.f32 -1.442695, %v131_v55 }
 0x196   :  { %v471_v60 = vmul.f32 -1.442695, %v134_v57 }
 0x197   :  { %494 = vpow2.f32 %v470_v59 }
 0x198   :  { %496 = vpow2.f32 %v471_v60 }
 0x199   :  { %v323_v61 = vpop.f32.mrf.mxu3 }
 0x19a   :  { %v324_v63 = vadd.f32 %v323_v61, %v44_v53 }
 0x19b   :  { %v136_v3 = vpop.f32.mrf.mxu1  ;;  %v320_v7 = vpop.f32.mrf.mxu2 }
 0x19c   :  { %v481_v8 = vmul.f32 -1.442695, %v324_v63  ;;  %v137_v15 = vadd.f32 %v136_v3, %v45_v62  ;;  %v321_v16 = vadd.f32 %v320_v7, %v43_v52 }
 0x19d   :  { %v495_v17 = vpop.eup %494 }
 0x19e   :  { %v497_v22 = vpop.eup %496  ;;  %v154_v23 = vadd.f32 1.0, %v495_v17  ;;  %498 = vpow2.f32 %v481_v8  ;;  %v472_v24 = vmul.f32 -1.442695, %v137_v15  ;;  %v480_v26 = vmul.f32 -1.442695, %v321_v16 }
 0x19f   :  { %v155_v25 = vadd.f32 1.0, %v497_v22 }
 0x1a0   :  { %500 = vrcp.f32 %v154_v23  ;;  %v169_v39 = vand.u32 2147483648, %v154_v23  ;;  %vm163_vm3 = vweird.f32 %v154_v23  ;;  %v167_v46 = vand.u32 2147483647, %v154_v23 }
 0x1a1   :  { %502 = vrcp.f32 %v155_v25  ;;  %v326_v27 = vpop.f32.mrf.mxu3  ;;  %v182_v50 = vand.u32 2147483647, %v155_v25  ;;  %v184_v51 = vand.u32 2147483648, %v155_v25  ;;  %vm178_vm8 = vweird.f32 %v155_v25 }
 0x1a2   :  { %504 = vpow2.f32 %v472_v24  ;;  %v327_v29 = vadd.f32 %v326_v27, %v45_v62  ;;  %v170_v53 = vor.u32 1.1754944e-38, %v169_v39  ;;  %vm168_vm7 = vcmp.eq.f32.partialorder %v167_v46, 8.507059e+37 }
 0x1a3   :  { %506 = vpow2.f32 %v480_v26  ;;  %v139_v30 = vpop.f32.mrf.mxu1  ;;  %vm183_vm10 = vcmp.eq.f32.partialorder %v182_v50, 8.507059e+37  ;;  %v185_v3 = vor.u32 1.1754944e-38, %v184_v51 }
 0x1a4   :  { %v499_v31 = vpop.eup %498  ;;  %v482_v32 = vmul.f32 -1.442695, %v327_v29  ;;  %v140_v33 = vadd.f32 %v139_v30, %v46_v28 }
 0x1a5   :  { %v697_v34 = vadd.f32 1.0, %v499_v31 }
 0x1a6   :  { %v501_v35 = vpop.eup %500  ;;  %508 = vpow2.f32 %v482_v32  ;;  %v473_v36 = vmul.f32 -1.442695, %v140_v33 }
 0x1a7   :  { %v503_v37 = vpop.eup %502  ;;  %510 = vrcp.f32 %v697_v34  ;;  %v159_v38 = vmul.f32 %v501_v35, %v154_v23  ;;  %vm164_vm4 = vweird.f32 %v501_v35 }
 0x1a8   :  { %v505_v40 = vpop.eup %504  ;;  %512 = vpow2.f32 %v473_v36  ;;  %v174_v41 = vmul.f32 %v503_v37, %v155_v25  ;;  %vm179_vm5 = vweird.f32 %v503_v37  ;;  %vm708_vm6 = vmor %vm163_vm3, %vm164_vm4 }
 0x1a9   :  { %v507_v42 = vpop.eup %506  ;;  %v700_v43 = vadd.f32 1.0, %v505_v40  ;;  %v329_v44 = vpop.f32.mrf.mxu3  ;;  %v160_v45 = vsub.f32 1.0, %v159_v38  ;;  %vm180_vm9 = vmor %vm178_vm8, %vm179_vm5 }
 0x1aa   :  { %v702_v47 = vadd.f32 1.0, %v507_v42  ;;  %v330_v48 = vadd.f32 %v329_v44, %v46_v28  ;;  %v175_v49 = vsub.f32 1.0, %v174_v41 }
 0x1ab   :  { %514 = vrcp.f32 %v700_v43  ;;  %v161_v52 = vmul.f32 %v501_v35, %v160_v45  ;;  %v197_v25 = vand.u32 2147483647, %v700_v43  ;;  %v199_v26 = vand.u32 2147483648, %v700_v43 }
 0x1ac   :  { %v509_v54 = vpop.eup %508  ;;  %516 = vrcp.f32 %v702_v47  ;;  %v483_v55 = vmul.f32 -1.442695, %v330_v48  ;;  %v176_v56 = vmul.f32 %v503_v37, %v175_v49  ;;  %vm353_vm11 = vweird.f32 %v702_v47 }
 0x1ad   :  { %v712_v58 = vpop.eup %510  ;;  %v714_v59 = vadd.f32 1.0, %v509_v54  ;;  %v162_v60 = vadd.f32 %v501_v35, %v161_v52  ;;  %v359_v30 = vand.u32 2147483648, %v702_v47  ;;  %vm193_vm13 = vweird.f32 %v700_v43 }
 0x1ae   :  { %v513_v61 = vpop.eup %512  ;;  %518 = vpow2.f32 %v483_v55  ;;  %v177_v62 = vadd.f32 %v503_v37, %v176_v56  ;;  %v364_v16 = vmul.f32 %v712_v58, %v697_v34  ;;  %vm737_vm15 = vcmp.eq.f32.partialorder %v197_v25, 8.507059e+37 }
 0x1af   :  { %v716_v63 = vadd.f32 1.0, %v513_v61  ;;  %v166_v7 = vsel %vm708_vm6, %v501_v35, %v162_v60  ;;  %520 = vrcp.f32 %v714_v59  ;;  %v357_v35 = vand.u32 2147483647, %v702_v47 }
 0x1b0   :  { %v181_v8 = vsel %vm180_vm9, %v503_v37, %v177_v62  ;;  %v171_v15 = vsel %vm168_vm7, %v170_v53, %v166_v7  ;;  %v365_v31 = vsub.f32 1.0, %v364_v16  ;;  %v200_v40 = vor.u32 1.1754944e-38, %v199_v26 }
 0x1b1   :  { %v515_v17 = vpop.eup %514  ;;  %522 = vrcp.f32 %v716_v63  ;;  %v186_v22 = vsel %vm183_vm10, %v185_v3, %v181_v8  ;;  %220 = vperm.xlu2 %491, %v171_v15   ;;  %v360_v45 = vor.u32 1.1754944e-38, %v359_v30  ;;  %vm358_vm2 = vcmp.eq.f32.partialorder %v357_v35, 8.507059e+37 }
 0x1b2   :  { %v517_v23 = vpop.eup %516  ;;  %225 = vperm.xlu0 %492, %v186_v22   ;;  %v189_v24 = vmul.f32 %v515_v17, %v700_v43  ;;  %vm194_vm14 = vweird.f32 %v515_v17  ;;  %v366_v43 = vmul.f32 %v712_v58, %v365_v31  ;;  %vm208_vm3 = vweird.f32 %v716_v63 }
 0x1b3   :  { %v349_v27 = vmul.f32 %v517_v23, %v702_v47  ;;  %vm354_vm12 = vweird.f32 %v517_v23  ;;  %vm195_vm1 = vmor %vm193_vm13, %vm194_vm14  ;;  %v214_v47 = vand.u32 2147483648, %v716_v63  ;;  %v212_v54 = vand.u32 2147483647, %v716_v63 }
 0x1b4   :  { %v519_v28 = vpop.eup %518  ;;  %v190_v29 = vsub.f32 1.0, %v189_v24  ;;  %vm743_vm0 = vmor %vm353_vm11, %vm354_vm12  ;;  %v367_v56 = vadd.f32 %v712_v58, %v366_v43  ;;  %vm369_vm5 = vweird.f32 %v712_v58  ;;  %vm368_vm6 = vweird.f32 %v697_v34 }
 0x1b5   :  { %v730_v32 = vadd.f32 1.0, %v519_v28  ;;  %v350_v33 = vsub.f32 1.0, %v349_v27  ;;  %v733_v36 = vpop.eup %520  ;;  %v374_v61 = vand.u32 2147483648, %v697_v34  ;;  %v372_v3 = vand.u32 2147483647, %v697_v34  ;;  %vm370_vm8 = vmor %vm368_vm6, %vm369_vm5 }
 0x1b6   :  { %v191_v37 = vmul.f32 %v515_v17, %v190_v29  ;;  %v379_v49 = vmul.f32 %v733_v36, %v714_v59  ;;  %v215_v8 = vor.u32 1.1754944e-38, %v214_v47  ;;  %vm213_vm9 = vcmp.eq.f32.partialorder %v212_v54, 8.507059e+37 }
 0x1b7   :  { %v523_v38 = vpop.eup %522  ;;  %524 = vrcp.f32 %v730_v32  ;;  %v351_v41 = vmul.f32 %v517_v23, %v350_v33  ;;  %v371_v16 = vsel %vm370_vm8, %v712_v58, %v367_v56  ;;  %vm373_vm10 = vcmp.eq.f32.partialorder %v372_v3, 8.507059e+37 }
 0x1b8   :  { %v192_v42 = vadd.f32 %v515_v17, %v191_v37  ;;  %v204_v46 = vmul.f32 %v523_v38, %v716_v63  ;;  %vm209_vm4 = vweird.f32 %v523_v38  ;;  %v380_v62 = vsub.f32 1.0, %v379_v49 }
 0x1b9   :  { %v352_v48 = vadd.f32 %v517_v23, %v351_v41  ;;  %vm210_vm7 = vmor %vm208_vm3, %vm209_vm4  ;;  %v404_v34 = vand.u32 2147483648, %v730_v32  ;;  %vm384_vm12 = vweird.f32 %v733_v36  ;;  %vm398_vm13 = vweird.f32 %v730_v32 }
 0x1ba   :  { %v196_v50 = vsel %vm195_vm1, %v515_v17, %v192_v42  ;;  %v205_v51 = vsub.f32 1.0, %v204_v46  ;;  %v381_v24 = vmul.f32 %v733_v36, %v380_v62  ;;  %v402_v58 = vand.u32 2147483647, %v730_v32 }
 0x1bb   :  { %v201_v52 = vsel %vm737_vm15, %v200_v40, %v196_v50  ;;  %v356_v53 = vsel %vm743_vm0, %v517_v23, %v352_v48  ;;  %v375_v23 = vor.u32 1.1754944e-38, %v374_v61  ;;  %v389_v29 = vand.u32 2147483648, %v714_v59 }
 0x1bc   :  { %230 = vperm.xlu1 %493, %v201_v52   ;;  %v361_v55 = vsel %vm358_vm2, %v360_v45, %v356_v53  ;;  %v206_v57 = vmul.f32 %v523_v38, %v205_v51  ;;  %v382_v28 = vadd.f32 %v733_v36, %v381_v24  ;;  %vm383_vm15 = vweird.f32 %v714_v59 }
 0x1bd   :  { %v525_v60 = vpop.eup %524  ;;  %410 = vperm.xlu2 %491, %v361_v55   ;;  %v376_v26 = vsel %vm373_vm10, %v375_v23, %v371_v16  ;;  %v387_v30 = vand.u32 2147483647, %v714_v59  ;;  %vm385_vm0 = vmor %vm383_vm15, %vm384_vm12  ;;  %v405_v33 = vor.u32 1.1754944e-38, %v404_v34  ;;  %vm403_vm1 = vcmp.eq.f32.partialorder %v402_v58, 8.507059e+37 }
 0x1be   :  { %v207_v7 = vadd.f32 %v523_v38, %v206_v57  ;;  %v394_v15 = vmul.f32 %v525_v60, %v730_v32  ;;  %vm399_vm11 = vweird.f32 %v525_v60  ;;  %v386_v35 = vsel %vm385_vm0, %v733_v36, %v382_v28 }
 0x1bf   :  { %vm400_vm14 = vmor %vm398_vm13, %vm399_vm11  ;;  %v390_v37 = vor.u32 1.1754944e-38, %v389_v29  ;;  %vm388_vm2 = vcmp.eq.f32.partialorder %v387_v30, 8.507059e+37 }
 0x1c0   :  { %v211_v17 = vsel %vm210_vm7, %v523_v38, %v207_v7  ;;  %v395_v22 = vsub.f32 1.0, %v394_v15 }
 0x1c1   :  { %v216_v25 = vsel %vm213_vm9, %v215_v8, %v211_v17  ;;  %v391_v39 = vsel %vm388_vm2, %v390_v37, %v386_v35 }
 0x1c2   :  { %v396_v63 = vmul.f32 %v525_v60, %v395_v22 }
 0x1c4   :  { %415 = vperm.xlu1 %493, %v376_v26   ;;  %v397_v27 = vadd.f32 %v525_v60, %v396_v63 }
 0x1c5   :  { %235 = vperm.xlu2 %491, %v216_v25  }
 0x1c6   :  { %v401_v31 = vsel %vm400_vm14, %v525_v60, %v397_v27 }
 0x1c7   :  { %v406_v38 = vsel %vm403_vm1, %v405_v33, %v401_v31 }
 0x1cc   :  { %425 = vperm.xlu1 %493, %v406_v38  }
 0x1cd   :  { %420 = vperm.xlu2 %491, %v391_v39  }
 0x20b   :  { %v221_v32 = vpop.permute.xlu2 %220 }
 0x20c   :  { %v238_v40 = vmul.f32 %v221_v32, %v659_v20  ;;  %v239_v41 = vmul.f32 %v221_v32, %v661_v21 }
 0x20e   :  { %246 = vst [vmem:[#allocation5] sm:$0xff] %v238_v40 }
 0x20f   :  { %247 = vst [vmem:[#allocation5 + $0x8] sm:$0xff] %v239_v41 }
 0x217   :  { %v411_v59 = vpop.permute.xlu2 %410 }
 0x218   :  { %v428_v42 = vmul.f32 %v411_v59, %v641_v11  ;;  %v429_v44 = vmul.f32 %v411_v59, %v643_v12 }
 0x21a   :  { %437 = vst [vmem:[#allocation5 + $0x40] sm:$0xff] %v428_v42 }
 0x21b   :  { %438 = vst [vmem:[#allocation5 + $0x48] sm:$0xff] %v429_v44 }
 0x21f   :  { %v236_v36 = vpop.permute.xlu2 %235 }
 0x220   :  { %v244_v45 = vmul.f32 %v236_v36, %v629_v5  ;;  %v245_v43 = vmul.f32 %v236_v36, %v631_v6 }
 0x222   :  { %252 = vst [vmem:[#allocation5 + $0x30] sm:$0xff] %v244_v45 }
 0x223   :  { %253 = vst [vmem:[#allocation5 + $0x38] sm:$0xff] %v245_v43 }
 0x224   :  { %v226_v46 = vpop.permute.xlu0 %225 }
 0x225   :  { %v240_v20 = vmul.f32 %v226_v46, %v655_v18  ;;  %v241_v21 = vmul.f32 %v226_v46, %v657_v19 }
 0x227   :  { %248 = vst [vmem:[#allocation5 + $0x10] sm:$0xff] %v240_v20  ;;  %v421_v48 = vpop.permute.xlu2 %420 }
 0x228   :  { %249 = vst [vmem:[#allocation5 + $0x18] sm:$0xff] %v241_v21  ;;  %v432_v11 = vmul.f32 %v421_v48, %v637_v9  ;;  %v433_v12 = vmul.f32 %v421_v48, %v639_v10 }
 0x22a   :  { %441 = vst [vmem:[#allocation5 + $0x60] sm:$0xff] %v432_v11 }
 0x22b   :  { %442 = vst [vmem:[#allocation5 + $0x68] sm:$0xff] %v433_v12 }
 0x22e   :  { %v231_v49 = vpop.permute.xlu1 %230 }
 0x22f   :  { %v242_v5 = vmul.f32 %v231_v49, %v645_v13  ;;  %v243_v6 = vmul.f32 %v231_v49, %v647_v14 }
 0x231   :  { %250 = vst [vmem:[#allocation5 + $0x20] sm:$0xff] %v242_v5 }
 0x232   :  { %251 = vst [vmem:[#allocation5 + $0x28] sm:$0xff] %v243_v6 }
 0x236   :  { %v416_v50 = vpop.permute.xlu1 %415 }
 0x237   :  { %v430_v18 = vmul.f32 %v416_v50, %v623_v2  ;;  %v431_v19 = vmul.f32 %v416_v50, %v627_v4 }
 0x239   :  { %439 = vst [vmem:[#allocation5 + $0x50] sm:$0xff] %v430_v18 }
 0x23a   :  { %440 = vst [vmem:[#allocation5 + $0x58] sm:$0xff] %v431_v19 }
 0x23e   :  { %v426_v9 = vpop.permute.xlu1 %425 }
 0x23f   :  { %v434_v10 = vmul.f32 %v426_v9, %v619_v0  ;;  %v435_v13 = vmul.f32 %v426_v9, %v621_v1 }
 0x241   :  { %443 = vst [vmem:[#allocation5 + $0x70] sm:$0xff] %v434_v10 }
 0x242   :  { %444 = vst [vmem:[#allocation5 + $0x78] sm:$0xff] %v435_v13 }
 0x243   :  { %457 = dma.vmem_to_hbm [thread:$0]  %s450_s16, 2048, %s452_s19, [#allocation4], %s579_s23, %s579_s23, %s580_s24  }
 0x244   :  { %576 = dma.done.wait [#allocation4], 2048  }
 0x245   :  { %577 = vsyncadd [#allocation4], 4294965248 }
 0x246   :  { %462 = vsyncpa [#allocation3], 1 }
 0x247   :  { %463 = vsyncpa [#allocation4], 1 }

</bundles_post_ra>
